<compile_context>
chip_gen: v7x
topology: tpu7x:2x2x1
jax: 0.10.0
libtpu: 0.0.40
codegen_flags: <defaults>
</compile_context>

<pallas_src>
from functools import partial

import jax
import jax.numpy as jnp
from jax import lax
from jax.experimental import pallas as pl
from jax.experimental.pallas import tpu as pltpu

CO_TILE = 128  # lane-dense output channel tile


def _conv_relu_kernel(x_ref, w_ref, o_ref, *, TH, W, KH, KW):
    """One (batch/row-tile, cout-tile) grid step.

    x_ref : (1, TH+KH-1, W+KW-1, Cin)  bf16  padded input row tile (with halo)
    w_ref : (KH*KW*Cin, CO_TILE)       bf16  im2col-ordered filter slab
    o_ref : (1, TH, W, CO_TILE)        f32   output tile (lane-dense, 128 wide)
    """
    x = x_ref[0]                                         # (TH+2, W+2, Cin)
    # Build the im2col tile once: the KH*KW statically shifted views are
    # concatenated along the K axis, so the whole tap sum becomes a single
    # MXU matmul (K = KH*KW*Cin) with internal accumulation instead of
    # KH*KW small dots + VPU adds.
    cols = [x[kh:kh + TH, kw:kw + W, :]
            for kh in range(KH) for kw in range(KW)]
    im2col = jnp.concatenate(cols, axis=-1)              # (TH, W, KH*KW*Cin)
    acc = jnp.dot(im2col, w_ref[...],
                  preferred_element_type=jnp.float32)    # (TH, W, CO_TILE) f32
    # Fused ReLU (post-conv, since pre_nm=False), full-lane store.
    o_ref[0] = jnp.maximum(acc, 0.0).astype(o_ref.dtype)


def _pick_tile_h(H, W, max_out_block_bytes=4 << 20):
    """Rows per tile so the f32 (TH, W, CO_TILE) output block stays bounded.

    4 MiB per output block (x2 for double buffering, plus the small bf16 input
    block) keeps us comfortably inside the default scoped VMEM on v5e/v6e and
    v7x's 64 MiB.
    """
    budget_rows = max(1, max_out_block_bytes // (W * CO_TILE * 4))
    target = max(1, min(H, budget_rows, 64))
    for th in range(target, 0, -1):
        if H % th == 0:
            return th
    return H


def convolution_forward(x_nchw, w_oihw, *, tile_h=None):
    """Equivalent of Convolution((B,Cin,H,W), 3, Cout).forward(x) with defaults.

    x_nchw : (B, Cin, H, W) float32
    w_oihw : (Cout, Cin, KH, KW) float32 (PyTorch Conv2d weight layout)
    returns: (B, Cout, H, W) float32
    """
    B, Cin, H, W = x_nchw.shape
    Cout, _, KH, KW = w_oihw.shape
    ph, pw = KH // 2, KW // 2                        # pad=True -> same padding

    TH = tile_h if tile_h is not None else _pick_tile_h(H, W)
    assert H % TH == 0, "tile_h must divide H"
    nTH = H // TH
    Wp = W + 2 * pw
    Cout_pad = pl.cdiv(Cout, CO_TILE) * CO_TILE
    n_co = Cout_pad // CO_TILE

    # ---- glue (plain JAX): layout, bf16 cast, zero pad, halo row tiles ----
    x_nhwc = jnp.transpose(x_nchw, (0, 2, 3, 1)).astype(jnp.bfloat16)
    x_pad = jnp.pad(x_nhwc, ((0, 0), (ph, ph), (pw, pw), (0, 0)))
    # Overlapping row tiles with a KH-1 row halo (only 2 extra rows per tile).
    x_tiles = jnp.stack(
        [x_pad[:, t * TH: t * TH + TH + 2 * ph] for t in range(nTH)], axis=1)
    x_tiles = x_tiles.reshape(B * nTH, TH + 2 * ph, Wp, Cin)

    # Weight OIHW -> im2col-ordered (KH*KW*Cin, Cout), zero-padded to 128 lanes.
    w2d = jnp.transpose(w_oihw, (2, 3, 1, 0)).reshape(KH * KW * Cin, Cout)
    w2d = jnp.pad(w2d.astype(jnp.bfloat16), ((0, 0), (0, Cout_pad - Cout)))

    out = pl.pallas_call(
        partial(_conv_relu_kernel, TH=TH, W=W, KH=KH, KW=KW),
        out_shape=jax.ShapeDtypeStruct((B * nTH, TH, W, Cout_pad), jnp.float32),
        grid=(B * nTH, n_co),
        in_specs=[
            pl.BlockSpec((1, TH + 2 * ph, Wp, Cin), lambda bt, c: (bt, 0, 0, 0)),
            # Weight slab is tiny (KH*KW*Cin x 128 bf16); default buffering is fine.
            pl.BlockSpec((KH * KW * Cin, CO_TILE), lambda bt, c: (0, c)),
        ],
        out_specs=pl.BlockSpec((1, TH, W, CO_TILE),
                               lambda bt, c: (bt, 0, 0, c)),
        compiler_params=pltpu.CompilerParams(
            dimension_semantics=("parallel", "parallel")),
    )(x_tiles, w2d)

    # Drop Cout padding, merge row tiles back, return NCHW.
    out = out.reshape(B, H, W, Cout_pad)[..., :Cout]
    return jnp.transpose(out, (0, 3, 1, 2)).astype(x_nchw.dtype)


if __name__ == "__main__":
    key = jax.random.PRNGKey(0)
    kx, kw = jax.random.split(key)

    # Small shapes consistent with the module: tensor_size=(B, Cin, H, W)
    B, Cin, H, W = 2, 4, 16, 16
    Cout, KH, KW = 8, 3, 3

    x = jax.random.normal(kx, (B, Cin, H, W), jnp.float32)

    # Deterministic synthetic weight, kaiming_normal_-style scale:
    # gain = calculate_gain('conv2d') = 1  ->  std = 1 / sqrt(fan_in)
    fan_in = Cin * KH * KW
    w = jax.random.normal(kw, (Cout, Cin, KH, KW), jnp.float32) / jnp.sqrt(
        jnp.float32(fan_in))
    # TODO(synk): dropout / normalization / shift / transpose / weight_nm /
    # equalized branches of the module are disabled under default args and not
    # implemented here.

    # Default tiling (one H tile at this small size) and a forced multi-tile
    # run to exercise the halo path.
    y = jax.block_until_ready(convolution_forward(x, w))
    y_tiled = jax.block_until_ready(convolution_forward(x, w, tile_h=8))

    # Reference: XLA conv + relu on bf16-rounded operands (kernel computes the
    # conv in bf16 with f32 accumulation).
    x_r = x.astype(jnp.bfloat16).astype(jnp.float32)
    w_r = w.astype(jnp.bfloat16).astype(jnp.float32)
    ref = lax.conv_general_dilated(
        x_r, w_r, window_strides=(1, 1), padding=((1, 1), (1, 1)),
        dimension_numbers=("NCHW", "OIHW", "NCHW"))
    ref = jnp.maximum(ref, 0.0)

    # Full-precision reference (loose tolerance accounts for bf16 operands).
    ref_f32 = jnp.maximum(
        lax.conv_general_dilated(
            x, w, window_strides=(1, 1), padding=((1, 1), (1, 1)),
            dimension_numbers=("NCHW", "OIHW", "NCHW")), 0.0)

    assert y.shape == (B, Cout, H, W)
    assert jnp.allclose(y, ref, atol=2e-3, rtol=2e-3), "mismatch vs bf16 ref"
    assert jnp.allclose(y_tiled, ref, atol=2e-3, rtol=2e-3), "halo-tiled mismatch"
    assert jnp.allclose(y, ref_f32, atol=8e-2, rtol=8e-2), "mismatch vs f32 ref"

    print("KERNEL_OK")
</pallas_src>

<mosaic_0001>
module attributes {stable_mosaic.version = 11 : i64} {
  func.func @_conv_relu_kernel(%arg0: i32, %arg1: i32, %arg2: memref<1x18x18x4xbf16, #tpu.memory_space<vmem>>, %arg3: memref<36x128xbf16, #tpu.memory_space<vmem>>, %arg4: memref<1x16x16x128xf32, #tpu.memory_space<vmem>>) attributes {dimension_semantics = [#tpu.dimension_semantics<parallel>, #tpu.dimension_semantics<parallel>], iteration_bounds = array<i64: 2, 1>, scalar_prefetch = 0 : i64, scratch_operands = 0 : i64, tpu.core_type = #tpu.core_type<tc>, window_params = [{transform_indices = @transform_0, window_bounds = array<i64: 1, 18, 18, 4>}, {transform_indices = @transform_1, window_bounds = array<i64: 36, 128>}, {transform_indices = @transform_2, window_bounds = array<i64: 1, 16, 16, 128>}]} {
    %c0 = arith.constant 0 : index
    %c0_0 = arith.constant 0 : index
    %c0_1 = arith.constant 0 : index
    %c0_2 = arith.constant 0 : index
    %0 = vector.load %arg2[%c0, %c0_0, %c0_1, %c0_2] : memref<1x18x18x4xbf16, #tpu.memory_space<vmem>>, vector<1x18x18x4xbf16>
    %1 = vector.shape_cast %0 : vector<1x18x18x4xbf16> to vector<18x18x4xbf16>
    %2 = vector.extract_strided_slice %1 {offsets = [0, 0, 0], sizes = [16, 16, 4], strides = [1, 1, 1]} : vector<18x18x4xbf16> to vector<16x16x4xbf16>
    %3 = vector.extract_strided_slice %1 {offsets = [0, 1, 0], sizes = [16, 16, 4], strides = [1, 1, 1]} : vector<18x18x4xbf16> to vector<16x16x4xbf16>
    %4 = vector.extract_strided_slice %1 {offsets = [0, 2, 0], sizes = [16, 16, 4], strides = [1, 1, 1]} : vector<18x18x4xbf16> to vector<16x16x4xbf16>
    %5 = vector.extract_strided_slice %1 {offsets = [1, 0, 0], sizes = [16, 16, 4], strides = [1, 1, 1]} : vector<18x18x4xbf16> to vector<16x16x4xbf16>
    %6 = vector.extract_strided_slice %1 {offsets = [1, 1, 0], sizes = [16, 16, 4], strides = [1, 1, 1]} : vector<18x18x4xbf16> to vector<16x16x4xbf16>
    %7 = vector.extract_strided_slice %1 {offsets = [1, 2, 0], sizes = [16, 16, 4], strides = [1, 1, 1]} : vector<18x18x4xbf16> to vector<16x16x4xbf16>
    %8 = vector.extract_strided_slice %1 {offsets = [2, 0, 0], sizes = [16, 16, 4], strides = [1, 1, 1]} : vector<18x18x4xbf16> to vector<16x16x4xbf16>
    %9 = vector.extract_strided_slice %1 {offsets = [2, 1, 0], sizes = [16, 16, 4], strides = [1, 1, 1]} : vector<18x18x4xbf16> to vector<16x16x4xbf16>
    %10 = vector.extract_strided_slice %1 {offsets = [2, 2, 0], sizes = [16, 16, 4], strides = [1, 1, 1]} : vector<18x18x4xbf16> to vector<16x16x4xbf16>
    %11 = tpu.concatenate %2, %3, %4, %5, %6, %7, %8, %9, %10 in 2 : vector<16x16x4xbf16>, vector<16x16x4xbf16>, vector<16x16x4xbf16>, vector<16x16x4xbf16>, vector<16x16x4xbf16>, vector<16x16x4xbf16>, vector<16x16x4xbf16>, vector<16x16x4xbf16>, vector<16x16x4xbf16> -> vector<16x16x36xbf16>
    %c0_3 = arith.constant 0 : index
    %c0_4 = arith.constant 0 : index
    %12 = vector.load %arg3[%c0_3, %c0_4] : memref<36x128xbf16, #tpu.memory_space<vmem>>, vector<36x128xbf16>
    %cst = arith.constant dense<0.000000e+00> : vector<16x16x128xf32>
    %13 = tpu.matmul %11, %12, %cst {dimension_numbers = #tpu.dot_dimension_numbers<[2], [0], [0, 1], [1], [0, 0, 0, 1, 1, 1], [], []>} : vector<16x16x36xbf16>, vector<36x128xbf16>, vector<16x16x128xf32> -> vector<16x16x128xf32>
    %cst_5 = arith.constant 0.000000e+00 : f32
    %14 = vector.broadcast %cst_5 : f32 to vector<16x16x128xf32>
    %15 = arith.maximumf %13, %14 : vector<16x16x128xf32>
    %c0_6 = arith.constant 0 : index
    %c0_7 = arith.constant 0 : index
    %c0_8 = arith.constant 0 : index
    %c0_9 = arith.constant 0 : index
    %16 = vector.load %arg4[%c0_6, %c0_7, %c0_8, %c0_9] : memref<1x16x16x128xf32, #tpu.memory_space<vmem>>, vector<1x16x16x128xf32>
    %17 = vector.shape_cast %16 : vector<1x16x16x128xf32> to vector<16x16x128xf32>
    %18 = vector.shape_cast %15 : vector<16x16x128xf32> to vector<1x16x16x128xf32>
    tpu.vector_store %arg4[%c0_6, %c0_7, %c0_8, %c0_9], %18 {strides = array<i32>} : memref<1x16x16x128xf32, #tpu.memory_space<vmem>>, vector<1x16x16x128xf32>,
    return
  }
  func.func @transform_0(%arg0: i32, %arg1: i32) -> (i32, i32, i32, i32) {
    %c0_i32 = arith.constant 0 : i32
    %c0_i32_0 = arith.constant 0 : i32
    %c0_i32_1 = arith.constant 0 : i32
    %c0_i32_2 = arith.constant 0 : i32
    return %arg0, %c0_i32, %c0_i32_0, %c0_i32_1 : i32, i32, i32, i32
  }
  func.func @transform_1(%arg0: i32, %arg1: i32) -> (i32, i32) {
    %c0_i32 = arith.constant 0 : i32
    %c0_i32_0 = arith.constant 0 : i32
    return %c0_i32, %arg1 : i32, i32
  }
  func.func @transform_2(%arg0: i32, %arg1: i32) -> (i32, i32, i32, i32) {
    %c0_i32 = arith.constant 0 : i32
    %c0_i32_0 = arith.constant 0 : i32
    %c0_i32_1 = arith.constant 0 : i32
    return %arg0, %c0_i32, %c0_i32_0, %arg1 : i32, i32, i32, i32
  }
}

</mosaic_0001>

<bundles_post_ra>
// kernel: tpu_custom_call.1
= control target key start
LH: loop header
LB: loop body
LE: loop exit
PB: predicated region body
PF: predicated region fallthrough
CT: control target
= control target key end

     0   :  { %7 = vsyncpa [#allocation3], 0  ;;  %s2710_s0 = inlined_call_operand.vmem [shape: bf16[2,18,18,4], index: 0, kind: input, shape index: {}]   ;;  %s2711_s1 = inlined_call_operand.vmem [shape: bf16[36,128], index: 1, kind: input, shape index: {}]   ;;  %s2712_s2 = inlined_call_operand.hbm [shape: f32[2,16,16,128], index: 2, kind: output, shape index: {}]  }
   0x1   :  { %9 = vsyncpa [#allocation3 + $0x1], 0  ;;  %s1892_s9 = smov 0   ;;  %s1894_s10 = smov 0  }
   0x2   :  { %s1896_s11 = smov 0   ;;  %s1898_s12 = smov 0  }
   0x3   :  { %s1900_s13 = smov 0   ;;  %s1902_s14 = smov 0  }
   0x4 LB: > { %s1548_s15 = sadd.s32 4294967295, %s1865_s14   ;;  %s1549_s16 = sadd.s32 4294967294, %s1865_s14   ;;  %s1865_s14 = sphi %s1902_s14, %s15_s14   ;;  %s1861_s13 = sphi %s1900_s13, %s2719_s13   ;;  %s1857_s12 = sphi %s1898_s12, %s2718_s12   ;;  %s1853_s11 = sphi %s1896_s11, %s2717_s11   ;;  %s1849_s10 = sphi %s1894_s10, %s2716_s10   ;;  %s1845_s9 = sphi %s1892_s9, %s2715_s9  }
   0x5   : > { %s27_s17 = sadd.s32 1, %s1861_s13  ;;  %s88_s18 = sadd.s32 1, %s1853_s11 }
   0x6   : > { %p29_p0 = scmp.ge.s32.totalorder %s27_s17, 2  ;;  %p98_p1 = scmp.ne.s32.totalorder %s1853_s11, %s1849_s10 }
   0x7   : > { %p99_p2 = scmp.eq.s32.totalorder %s1548_s15, 1  ;;  %p104_p3 = scmp.ne.s32.totalorder %s1849_s10, %s1845_s9 }
   0x8   : > { %s2721_s17 = smov (%p29_p0, %s27_s17), 0  ;;  %p105_p5 = scmp.eq.s32.totalorder %s1549_s16, 1 }
   0x9   : > { %p1932_p4 = por %p99_p2, %p98_p1  ;;  %s83_s20 = ssub.s32 %s1861_s13, %s2721_s17 }
   0xa   : > { %p1553_p6 = scmp.ge.s32.totalorder %s1865_s14, 1  ;;  %p86_p7 = scmp.eq.s32.totalorder %s83_s20, 0 }
   0xb   : > { %p1939_p8 = por %p105_p5, %p104_p3  ;;  %p138_p9 = scmp.lt.s32.totalorder %s1865_s14, 3 }
   0xc   : > { %s1945_s22 = scalar_select %p86_p7, %s1853_s11, %s88_s18  }
   0xd   : > { %p139_p10 = pnand %p1553_p6, %p138_p9 }
   0xe   : > { %p164_p11 = scmp.lt.s32.totalorder (!%p139_p10), %s1857_s12, 1  ;;  %vm581_vm0 = vcmask (!%p139_p10), 1046528   ;;  %s1867_s28 = smov (!%p139_p10), 12   ;;  %vm356_vm1 = vsmask.f32 (!%p139_p10), 7424  ;;  %vm1217_vm2 = vcmask (!%p139_p10), 1041408  }
   0xf   : > { %142 = sbr.rel (%p139_p10) target bundleno = 629 (0x275), region = 28  ;;  %s1868_s29 = smov (!%p139_p10), 8   ;;  %vm900_vm3 = vcmask (!%p139_p10), 31744   ;;  %vm933_vm4 = vcmask (!%p139_p10), 64512   ;;  %vm999_vm5 = vcmask (!%p139_p10), 130048   ;;  %vm966_vm6 = vcmask (!%p139_p10), 97280  }
  0x10   : > { %s1869_s30 = smov (!%p139_p10), 4   ;;  %s1870_s3 = smov (!%p139_p10), 16   ;;  %vm1032_vm7 = vcmask (!%p139_p10), 162816   ;;  %vm1065_vm8 = vcmask (!%p139_p10), 195584   ;;  %vm1098_vm9 = vcmask (!%p139_p10), 228352   ;;  %vm1131_vm10 = vcmask (!%p139_p10), 261120  }
  0x11   : > { %s1871_s4 = smov (!%p139_p10), 20   ;;  %s1872_s5 = smov (!%p139_p10), 24   ;;  %vm1184_vm11 = vcmask (!%p139_p10), 293888  }
  0x12   : > { %s1873_s16 = smov (!%p139_p10), 28   ;;  %s1875_s6 = smov (!%p139_p10), [#allocation2]  }
  0x13   : > { %s1791_s7 = sshll.u32 (!%p139_p10), %s1875_s6, 4  ;;  %s1792_s7 = int_to_ptr.vmem [resolvable:$false] %s1791_s7 }
  0x14   : > { %s1793_s8 = scalar_lea.vmem (!%p139_p10), %s1792_s7, 8192 }
  0x16   : > { %s165_s23 = scalar_select %p164_p11, %s1857_s12, 1 }
  0x18   : > { %s1682_s24 = smul.u32 216, %s165_s23  ;;  %s1874_s23 = smov 32  }
  0x1a   : > { %s1952_s27 = scalar_lea.vmem %s2710_s0, %s1682_s24  ;;  %s161_s24 = sand.u32 1, %s1849_s10  }
  0x1b   : > { %v1955_v0 = vld [vmem:[%s1952_s27 + $0x6c] sm:$0xff]   ;;  %v1965_v2 = vld [vmem:[%s1952_s27 + $0x60] sm:$0xff]   ;;  %v1750_v3 = vld [vmem:[%s1952_s27 + $0x68] ss:$0 sps:$4 sm:$0x11]   ;;  %s1554_s25 = sshll.u32 %s161_s24, 8 }
  0x1c   : > { %v1958_v1 = vld [vmem:[%s1952_s27 + $0xc] sm:$0xff]   ;;  %683 = vrot.lane.b32.xlu1 %v1955_v0, %s1867_s28  ;;  %v1969_v4 = vld [vmem:[%s1952_s27] sm:$0xff]   ;;  %v609_v5 = vrot.slane %v1955_v0, 1  ;;  %v606_v6 = vrot.slane %v1965_v2, 1  ;;  %v607_v7 = vrot.slane %v1750_v3, 1  ;;  %v466_v26 = vshrl.u32 %v1955_v0, 16 }
  0x1d   : > { %667 = vrot.lane.b32.xlu0 %v1958_v1, %s1867_s28  ;;  %v1752_v8 = vld [vmem:[%s1952_s27 + $0x8] ss:$0 sps:$4 sm:$0x11]   ;;  %v585_v9 = vrot.slane %v1958_v1, 1  ;;  %v582_v10 = vrot.slane %v1969_v4, 1  ;;  %v370_v16 = vshrl.u32 %v1958_v1, 16 }
  0x1e   : > { %v1753_v11 = vld [vmem:[%s1952_s27 + $0x74] ss:$0 sps:$4 sm:$0x11]   ;;  %v1978_v12 = vsel %vm581_vm0, %v606_v6, %v607_v7  ;;  %v583_v13 = vrot.slane %v1752_v8, 1  ;;  %v372_v17 = vshll.u32 %v1958_v1, 16  ;;  %v358_v18 = vshrl.u32 %v1969_v4, 16 }
  0x1f   : > { %v1754_v14 = vld [vmem:[%s1952_s27 + $0x14] ss:$0 sps:$4 sm:$0x11]   ;;  %v610_v15 = vrot.slane %v1753_v11, 1  ;;  %v360_v22 = vshll.u32 %v1969_v4, 16  ;;  %v365_v25 = vshll.u32 %v1752_v8, 16 }
  0x20   : > { %646 = vrot.lane.b32.xlu1 %v1978_v12, %s1868_s29  ;;  %v584_v19 = vsel %vm581_vm0, %v582_v10, %v583_v13  ;;  %v586_v20 = vrot.slane %v1754_v14, 1  ;;  %v377_v21 = vshll.u32 %v1754_v14, 16  ;;  %v374_v24 = vrot.slane %v372_v17, 1  ;;  %v2000_v39 = vld [vmem:[%s1952_s27 + $0x78] sm:$0xff]   ;;  %v2048_v10 = vld [vmem:[%s1952_s27 + $0x84] sm:$0xff]   ;;  %s2618_s26 = scalar_lea.vmem [#allocation2], %s1554_s25 }
  0x21   : > { %630 = vrot.lane.b32.xlu0 %v584_v19, %s1868_s29  ;;  %v1990_v23 = vsel %vm581_vm0, %v609_v5, %v610_v15  ;;  %v362_v29 = vrot.slane %v360_v22, 1  ;;  %v468_v30 = vshll.u32 %v1955_v0, 16  ;;  %v367_v32 = vrot.slane %v365_v25, 1  ;;  %v2006_v46 = vld [vmem:[%s1952_s27 + $0x18] sm:$0xff]   ;;  %v2058_v14 = vld [vmem:[%s1952_s27 + $0x24] sm:$0xff]  }
  0x22   : > { %v587_v27 = vsel %vm581_vm0, %v585_v9, %v586_v20  ;;  %v379_v28 = vrot.slane %v377_v21, 1  ;;  %v375_v31 = vor.u32 %v374_v24, %v370_v16  ;;  %v473_v33 = vshll.u32 %v1753_v11, 16  ;;  %v1757_v47 = vld [vmem:[%s1952_s27 + $0x80] ss:$0 sps:$4 sm:$0x11]  }
  0x23   : > { %v454_v34 = vshrl.u32 %v1965_v2, 16  ;;  %v363_v35 = vor.u32 %v362_v29, %v358_v18  ;;  %v470_v36 = vrot.slane %v468_v30, 1  ;;  %v456_v37 = vshll.u32 %v1965_v2, 16  ;;  %v1758_v52 = vld [vmem:[%s1952_s27 + $0x20] ss:$0 sps:$4 sm:$0x11]  }
  0x24   : > { %648 = vrot.lane.b32.xlu1 %v1990_v23, %s1868_s29  ;;  %v461_v38 = vshll.u32 %v1750_v3, 16  ;;  %v380_v40 = vsel %vm356_vm1, %v375_v31, %v379_v28  ;;  %v475_v41 = vrot.slane %v473_v33, 1  ;;  %v480_v50 = vshll.u32 %v2000_v39, 16  ;;  %v1761_v15 = vld [vmem:[%s1952_s27 + $0x8c] ss:$0 sps:$4 sm:$0x11]  }
  0x25   : > { %632 = vrot.lane.b32.xlu0 %v587_v27, %s1868_s29  ;;  %v368_v42 = vsel %vm356_vm1, %v363_v35, %v367_v32  ;;  %v471_v43 = vor.u32 %v470_v36, %v466_v26  ;;  %v458_v44 = vrot.slane %v456_v37, 1  ;;  %v384_v53 = vshll.u32 %v2006_v46, 16  ;;  %v1762_v18 = vld [vmem:[%s1952_s27 + $0x2c] ss:$0 sps:$4 sm:$0x11]   ;;  %v1775_v22 = vld [vmem:[%s2711_s1] sm:$0xff]  }
  0x26   : > { %v463_v45 = vrot.slane %v461_v38, 1  ;;  %v478_v54 = vshrl.u32 %v2000_v39, 16  ;;  %v482_v55 = vrot.slane %v480_v50, 1  ;;  %v485_v56 = vshll.u32 %v1757_v47, 16  ;;  %1636 = vmatprep.subr.bf16.mxu0 %v1775_v22  ;;  %1674 = vmatprep.subr.bf16.mxu1 %v1775_v22 }
  0x27   : > { %v2011_v48 = vsel %vm356_vm1, %v471_v43, %v475_v41  ;;  %v459_v49 = vor.u32 %v458_v44, %v454_v34  ;;  %v382_v57 = vshrl.u32 %v2006_v46, 16  ;;  %v386_v58 = vrot.slane %v384_v53, 1  ;;  %1637 = vmatpush3.bf16.msra.mxu0 %v1775_v22  ;;  %1677 = vmatpush3.bf16.msra.mxu1 %v1775_v22  ;;  %v1779_v32 = vld [vmem:[%s2711_s1 + $0x10] ss:$0 sps:$4 sm:$0x33]  }
  0x28   : > { %551 = vrot.lane.b32.xlu1 %v380_v40, %s1869_s30  ;;  %v389_v59 = vshll.u32 %v1758_v52, 16  ;;  %v483_v60 = vor.u32 %v482_v55, %v478_v54  ;;  %v487_v61 = vrot.slane %v485_v56, 1  ;;  %v612_v6 = vrot.slane %v2000_v39, 1  ;;  %v2114_v43 = vld [vmem:[%s1952_s27 + $0x90] sm:$0xff]  }
  0x29   : > { %549 = vrot.lane.b32.xlu0 %v368_v42, %s1869_s30  ;;  %v2016_v51 = vsel %vm356_vm1, %v459_v49, %v463_v45  ;;  %v387_v62 = vor.u32 %v386_v58, %v382_v57  ;;  %v613_v7 = vrot.slane %v1757_v47, 1  ;;  %v588_v8 = vrot.slane %v2006_v46, 1  ;;  %v2119_v44 = vld [vmem:[%s1952_s27 + $0x30] sm:$0xff]   ;;  %v1765_v45 = vld [vmem:[%s1952_s27 + $0x98] ss:$0 sps:$4 sm:$0x11]  }
  0x2a   : > { %v391_v63 = vrot.slane %v389_v59, 1  ;;  %v2033_v3 = vsel %vm356_vm1, %v483_v60, %v487_v61  ;;  %v589_v9 = vrot.slane %v1758_v52, 1  ;;  %v492_v16 = vshll.u32 %v2048_v10, 16  ;;  %v1766_v49 = vld [vmem:[%s1952_s27 + $0x38] ss:$0 sps:$4 sm:$0x11]  }
  0x2b   : > { %v2051_v11 = vsel %vm581_vm0, %v612_v6, %v613_v7  ;;  %v490_v17 = vshrl.u32 %v2048_v10, 16  ;;  %v497_v19 = vshll.u32 %v1761_v15, 16  ;;  %v396_v20 = vshll.u32 %v2058_v14, 16 }
  0x2c   : > { %567 = vrot.lane.b32.xlu1 %v2011_v48, %s1869_s30  ;;  %v2037_v5 = vsel %vm356_vm1, %v387_v62, %v391_v63  ;;  %v2055_v13 = vsel %vm581_vm0, %v588_v8, %v589_v9  ;;  %v494_v21 = vrot.slane %v492_v16, 1  ;;  %v394_v24 = vshrl.u32 %v2058_v14, 16  ;;  %v2148_v9 = vld [vmem:[%s1952_s27 + $0x9c] sm:$0xff]  }
  0x2d   : > { %565 = vrot.lane.b32.xlu0 %v2016_v51, %s1869_s30  ;;  %v398_v25 = vrot.slane %v396_v20, 1  ;;  %v401_v26 = vshll.u32 %v1762_v18, 16  ;;  %v499_v29 = vrot.slane %v497_v19, 1  ;;  %v1219_v34 = vsel %vm1217_vm2, %v1779_v32, 0 }
  0x2e   : > { %v495_v28 = vor.u32 %v494_v21, %v490_v17  ;;  %v615_v36 = vrot.slane %v2048_v10, 1  ;;  %v616_v37 = vrot.slane %v1761_v15, 1  ;;  %v591_v38 = vrot.slane %v2058_v14, 1  ;;  %v1769_v15 = vld [vmem:[%s1952_s27 + $0xa4] ss:$0 sps:$4 sm:$0x11]  }
  0x2f   : > { %v399_v30 = vor.u32 %v398_v25, %v394_v24  ;;  %v403_v31 = vrot.slane %v401_v26, 1  ;;  %v504_v47 = vshll.u32 %v2114_v43, 16  ;;  %v408_v50 = vshll.u32 %v2119_v44, 16  ;;  %v1770_v17 = vld [vmem:[%s1952_s27 + $0x44] ss:$0 sps:$4 sm:$0x11]  }
  0x30   : > { %685 = vrot.lane.b32.xlu1 %v2000_v39, %s1867_s28  ;;  %v500_v33 = vsel %vm356_vm1, %v495_v28, %v499_v29  ;;  %v617_v41 = vsel %vm581_vm0, %v615_v36, %v616_v37  ;;  %v502_v52 = vshrl.u32 %v2114_v43, 16  ;;  %v509_v54 = vshll.u32 %v1765_v45, 16 }
  0x31   : > { %669 = vrot.lane.b32.xlu0 %v2006_v46, %s1867_s28  ;;  %v404_v35 = vsel %vm356_vm1, %v399_v30, %v403_v31  ;;  %v506_v53 = vrot.slane %v504_v47, 1  ;;  %v406_v55 = vshrl.u32 %v2119_v44, 16  ;;  %v410_v56 = vrot.slane %v408_v50, 1 }
  0x32   : > { %v413_v57 = vshll.u32 %v1766_v49, 16  ;;  %v511_v59 = vrot.slane %v509_v54, 1  ;;  %v594_v6 = vrot.slane %v2119_v44, 1  ;;  %v595_v7 = vrot.slane %v1766_v49, 1 }
  0x33   : > { %v507_v58 = vor.u32 %v506_v53, %v502_v52  ;;  %v411_v60 = vor.u32 %v410_v56, %v406_v55  ;;  %v516_v16 = vshll.u32 %v2148_v9, 16  ;;  %v514_v19 = vshrl.u32 %v2148_v9, 16  ;;  %v2214_v56 = vld [vmem:[%s1952_s27 + $0xa8] sm:$0xff]  }
  0x34   : > { %730 = vrot.lane.b32.xlu1 %v2011_v48, %s1870_s3  ;;  %v415_v61 = vrot.slane %v413_v57, 1  ;;  %v521_v21 = vshll.u32 %v1769_v15, 16  ;;  %v425_v25 = vshll.u32 %v1770_v17, 16  ;;  %v621_v36 = vrot.slane %v2148_v9, 1 }
  0x35   : > { %714 = vrot.lane.b32.xlu0 %v380_v40, %s1870_s3  ;;  %v592_v40 = vrot.slane %v1762_v18, 1  ;;  %v512_v62 = vsel %vm356_vm1, %v507_v58, %v511_v59  ;;  %v518_v20 = vrot.slane %v516_v16, 1  ;;  %v622_v37 = vrot.slane %v1769_v15, 1  ;;  %v2220_v58 = vld [vmem:[%s1952_s27 + $0x48] sm:$0xff]  }
  0x36   : > { %v416_v63 = vsel %vm356_vm1, %v411_v60, %v415_v61  ;;  %v427_v29 = vrot.slane %v425_v25, 1  ;;  %v1773_v60 = vld [vmem:[%s1952_s27 + $0xb0] ss:$0 sps:$4 sm:$0x11]   ;;  %v528_v61 = vshll.u32 %v2214_v56, 16  ;;  %v430_v15 = vshrl.u32 %v2220_v58, 16 }
  0x37   : > { %v593_v42 = vsel %vm581_vm0, %v591_v38, %v592_v40  ;;  %v519_v26 = vor.u32 %v518_v20, %v514_v19 }
  0x38   : > { %732 = vrot.lane.b32.xlu1 %v2033_v3, %s1870_s3 }
  0x39   : > { %716 = vrot.lane.b32.xlu0 %v2037_v5, %s1870_s3 }
  0x3c   : > { %765 = vrot.lane.b32.xlu1 %v1990_v23, %s1871_s4 }
  0x3d   : > { %749 = vrot.lane.b32.xlu0 %v587_v27, %s1871_s4  ;;  %v1776_v27 = vld [vmem:[%s2711_s1 + $0x8] sm:$0xff]  }
  0x3e   : > { %1638 = vmatprep.subr.bf16.mxu0 %v1776_v27  ;;  %1675 = vmatprep.subr.bf16.mxu1 %v1776_v27 }
  0x3f   : > { %1639 = vmatpush3.bf16.msra.mxu0 %v1776_v27  ;;  %1678 = vmatpush3.bf16.msra.mxu1 %v1776_v27  ;;  %v523_v27 = vrot.slane %v521_v21, 1 }
  0x40   : > { %767 = vrot.lane.b32.xlu1 %v2051_v11, %s1871_s4  ;;  %1680 = vmatprep.subr.msk.bf16.mxu0 %vm1217_vm2, %v1779_v32 }
  0x41   : > { %751 = vrot.lane.b32.xlu0 %v2055_v13, %s1871_s4  ;;  %1681 = vmatprep.subr.msk.bf16.mxu1 %vm1217_vm2, %v1779_v32  ;;  %v524_v31 = vsel %vm356_vm1, %v519_v26, %v523_v27 }
  0x43   : > { %1641 = vmatpush3.bf16.msra.mxu0 %v1219_v34  ;;  %1679 = vmatpush3.bf16.msra.mxu1 %v1219_v34 }
  0x44   : > { %802 = vrot.lane.b32.xlu1 %v2000_v39, %s1872_s5 }
  0x45   : > { %786 = vrot.lane.b32.xlu0 %v2006_v46, %s1872_s5 }
  0x48   : > { %804 = vrot.lane.b32.xlu1 %v2048_v10, %s1872_s5 }
  0x49   : > { %788 = vrot.lane.b32.xlu0 %v2058_v14, %s1872_s5 }
  0x4c   : > { %849 = vrot.lane.b32.xlu1 %v2033_v3, %s1873_s16 }
  0x4d   : > { %833 = vrot.lane.b32.xlu0 %v2037_v5, %s1873_s16 }
  0x50   : > { %851 = vrot.lane.b32.xlu1 %v500_v33, %s1873_s16 }
  0x51   : > { %835 = vrot.lane.b32.xlu0 %v404_v35, %s1873_s16 }
  0x54   : > { %884 = vrot.lane.b32.xlu1 %v2051_v11, %s1874_s23 }
  0x55   : > { %868 = vrot.lane.b32.xlu0 %v2055_v13, %s1874_s23 }
  0x58   : > { %569 = vrot.lane.b32.xlu1 %v2033_v3, %s1869_s30  ;;  %v618_v3 = vrot.slane %v2114_v43, 1 }
  0x59   : > { %553 = vrot.lane.b32.xlu0 %v2037_v5, %s1869_s30  ;;  %v619_v5 = vrot.slane %v1765_v45, 1  ;;  %v623_v45 = vsel %vm581_vm0, %v621_v36, %v622_v37  ;;  %v624_v36 = vrot.slane %v2214_v56, 1  ;;  %v625_v37 = vrot.slane %v1773_v60, 1 }
  0x5b   : > { %v620_v8 = vsel %vm581_vm0, %v618_v3, %v619_v5  ;;  %v432_v3 = vshll.u32 %v2220_v58, 16 }
  0x5c   : > { %886 = vrot.lane.b32.xlu1 %v617_v41, %s1874_s23 }
  0x5d   : > { %870 = vrot.lane.b32.xlu0 %v593_v42, %s1874_s23  ;;  %v434_v16 = vrot.slane %v432_v3, 1  ;;  %v2276_v3 = vld [vmem:[%s1952_s27 + $0xb4] sm:$0xff]  }
  0x60   : > { %571 = vrot.lane.b32.xlu1 %v500_v33, %s1869_s30 }
  0x61   : > { %555 = vrot.lane.b32.xlu0 %v404_v35, %s1869_s30 }
  0x64   : > { %650 = vrot.lane.b32.xlu1 %v2051_v11, %s1868_s29  ;;  %v596_v11 = vsel %vm581_vm0, %v594_v6, %v595_v7  ;;  %v526_v6 = vshrl.u32 %v2214_v56, 16  ;;  %v530_v7 = vrot.slane %v528_v61, 1 }
  0x65   : > { %634 = vrot.lane.b32.xlu0 %v2055_v13, %s1868_s29  ;;  %v2153_v13 = vld [vmem:[%s1952_s27 + $0x3c] sm:$0xff]  }
  0x66   : > { %v420_v18 = vshll.u32 %v2153_v13, 16  ;;  %v418_v22 = vshrl.u32 %v2153_v13, 16  ;;  %v597_v40 = vrot.slane %v2153_v13, 1  ;;  %v531_v19 = vor.u32 %v530_v7, %v526_v6 }
  0x68   : > { %652 = vrot.lane.b32.xlu1 %v617_v41, %s1868_s29  ;;  %v422_v24 = vrot.slane %v420_v18, 1 }
  0x69   : > { %636 = vrot.lane.b32.xlu0 %v593_v42, %s1868_s29 }
  0x6a   : > { %v423_v28 = vor.u32 %v422_v24, %v418_v22  ;;  %v435_v22 = vor.u32 %v434_v16, %v430_v15 }
  0x6c   : > { %687 = vrot.lane.b32.xlu1 %v2048_v10, %s1867_s28 }
  0x6d   : > { %671 = vrot.lane.b32.xlu0 %v2058_v14, %s1867_s28 }
  0x70   : > { %689 = vrot.lane.b32.xlu1 %v2114_v43, %s1867_s28 }
  0x71   : > { %673 = vrot.lane.b32.xlu0 %v2119_v44, %s1867_s28 }
  0x74   : > { %734 = vrot.lane.b32.xlu1 %v500_v33, %s1870_s3  ;;  %v428_v33 = vsel %vm356_vm1, %v423_v28, %v427_v29 }
  0x75   : > { %718 = vrot.lane.b32.xlu0 %v404_v35, %s1870_s3 }
  0x78   : > { %736 = vrot.lane.b32.xlu1 %v512_v62, %s1870_s3 }
  0x79   : > { %720 = vrot.lane.b32.xlu0 %v416_v63, %s1870_s3 }
  0x7c   : > { %769 = vrot.lane.b32.xlu1 %v617_v41, %s1871_s4  ;;  %v598_v41 = vrot.slane %v1770_v17, 1 }
  0x7d   : > { %753 = vrot.lane.b32.xlu0 %v593_v42, %s1871_s4 }
  0x7e   : > { %v2199_v49 = vsel %vm581_vm0, %v597_v40, %v598_v41 }
  0x80   : > { %771 = vrot.lane.b32.xlu1 %v620_v8, %s1871_s4 }
  0x81   : > { %755 = vrot.lane.b32.xlu0 %v596_v11, %s1871_s4 }
  0x84   : > { %806 = vrot.lane.b32.xlu1 %v2114_v43, %s1872_s5 }
  0x85   : > { %790 = vrot.lane.b32.xlu0 %v2119_v44, %s1872_s5 }
  0x88   : > { %808 = vrot.lane.b32.xlu1 %v2148_v9, %s1872_s5 }
  0x89   : > { %792 = vrot.lane.b32.xlu0 %v2153_v13, %s1872_s5 }
  0x8c   : > { %853 = vrot.lane.b32.xlu1 %v512_v62, %s1873_s16 }
  0x8d   : > { %837 = vrot.lane.b32.xlu0 %v416_v63, %s1873_s16 }
  0x8e   : > { %v2172_v30 = vpop.permute.xlu1 %683 }
  0x8f   : > { %v2176_v32 = vpop.permute.xlu0 %667 }
  0x90   : > { %855 = vrot.lane.b32.xlu1 %v524_v31, %s1873_s16 }
  0x91   : > { %839 = vrot.lane.b32.xlu0 %v428_v33, %s1873_s16 }
  0x92   : > { %v2181_v34 = vpop.permute.xlu1 %646 }
  0x93   : > { %v2183_v35 = vpop.permute.xlu0 %630 }
  0x94   : > { %888 = vrot.lane.b32.xlu1 %v620_v8, %s1874_s23 }
  0x95   : > { %872 = vrot.lane.b32.xlu0 %v596_v11, %s1874_s23 }
  0x96   : > { %v2188_v38 = vpop.permute.xlu1 %648 }
  0x97   : > { %v2191_v42 = vpop.permute.xlu0 %632 }
  0x98   : > { %573 = vrot.lane.b32.xlu1 %v512_v62, %s1869_s30 }
  0x99   : > { %557 = vrot.lane.b32.xlu0 %v416_v63, %s1869_s30  ;;  %v1774_v63 = vld [vmem:[%s1952_s27 + $0x50] ss:$0 sps:$4 sm:$0x11]  }
  0x9a   : > { %v2196_v47 = vpop.permute.xlu1 %551  ;;  %v437_v17 = vshll.u32 %v1774_v63, 16  ;;  %v601_v40 = vrot.slane %v1774_v63, 1 }
  0x9b   : > { %v550_v50 = vpop.permute.xlu0 %549 }
  0x9c   : > { %890 = vrot.lane.b32.xlu1 %v623_v45, %s1874_s23  ;;  %v439_v24 = vrot.slane %v437_v17, 1  ;;  %v902_v6 = vsel %vm900_vm3, %v1969_v4, %v550_v50 }
  0x9d   : > { %874 = vrot.lane.b32.xlu0 %v2199_v49, %s1874_s23  ;;  %v935_v4 = vsel %vm933_vm4, %v902_v6, %v2183_v35  ;;  %v2305_v35 = vld [vmem:[%s1952_s27 + $0x5c] ss:$0 sps:$4 sm:$0x11]  }
  0x9e   : > { %v2204_v52 = vpop.permute.xlu1 %567  ;;  %v2257_v28 = vsel %vm356_vm1, %v435_v22, %v439_v24  ;;  %v538_v22 = vshrl.u32 %v2276_v3, 16 }
  0x9f   : > { %v566_v53 = vpop.permute.xlu0 %565 }
  0xa0   : > { %575 = vrot.lane.b32.xlu1 %v524_v31, %s1869_s30  ;;  %v918_v41 = vsel %vm900_vm3, %v1965_v2, %v566_v53 }
  0xa1   : > { %559 = vrot.lane.b32.xlu0 %v428_v33, %s1869_s30  ;;  %v951_v53 = vsel %vm933_vm4, %v918_v41, %v2181_v34  ;;  %v540_v34 = vshll.u32 %v2276_v3, 16 }
  0xa2   : > { %v2208_v54 = vpop.permute.xlu1 %685  ;;  %v984_v50 = vsel %vm966_vm6, %v951_v53, %v2172_v30  ;;  %v449_v53 = vshll.u32 %v2305_v35, 16 }
  0xa3   : > { %v2210_v55 = vpop.permute.xlu0 %669 }
  0xa4   : > { %654 = vrot.lane.b32.xlu1 %v620_v8, %s1868_s29  ;;  %v533_v8 = vshll.u32 %v1773_v60, 16  ;;  %v2273_v60 = vsel %vm581_vm0, %v624_v36, %v625_v37  ;;  %v542_v36 = vrot.slane %v540_v34, 1 }
  0xa5   : > { %638 = vrot.lane.b32.xlu0 %v596_v11, %s1868_s29 }
  0xa6   : > { %v2217_v57 = vpop.permute.xlu1 %730  ;;  %v535_v20 = vrot.slane %v533_v8, 1 }
  0xa7   : > { %v2222_v59 = vpop.permute.xlu0 %714  ;;  %v1017_v16 = vsel %vm999_vm5, %v984_v50, %v2217_v57 }
  0xa8   : > { %656 = vrot.lane.b32.xlu1 %v623_v45, %s1868_s29  ;;  %v2253_v26 = vsel %vm356_vm1, %v531_v19, %v535_v20  ;;  %v968_v19 = vsel %vm966_vm6, %v935_v4, %v2176_v32  ;;  %v920_v32 = vsel %vm900_vm3, %v1955_v0, %v2204_v52  ;;  %v904_v0 = vsel %vm900_vm3, %v1958_v1, %v2196_v47 }
  0xa9   : > { %640 = vrot.lane.b32.xlu0 %v2199_v49, %s1868_s29  ;;  %v1001_v57 = vsel %vm999_vm5, %v968_v19, %v2222_v59  ;;  %v543_v4 = vor.u32 %v542_v36, %v538_v22  ;;  %v937_v47 = vsel %vm933_vm4, %v904_v0, %v2191_v42 }
  0xaa   : > { %v2229_v62 = vpop.permute.xlu1 %732 }
  0xab   : > { %v2233_v5 = vpop.permute.xlu0 %716 }
  0xac   : > { %691 = vrot.lane.b32.xlu1 %v2148_v9, %s1867_s28 }
  0xad   : > { %675 = vrot.lane.b32.xlu0 %v2153_v13, %s1867_s28 }
  0xae   : > { %v766_v11 = vpop.permute.xlu1 %765 }
  0xaf   : > { %v2241_v18 = vpop.permute.xlu0 %749  ;;  %v1050_v20 = vsel %vm1032_vm7, %v1017_v16, %v766_v11  ;;  %v451_v16 = vrot.slane %v449_v53, 1  ;;  %v1782_v53 = vld [vmem:[%s1952_s27 + $0xc0] sm:$0xff]  }
  0xb0   : > { %693 = vrot.lane.b32.xlu1 %v2214_v56, %s1867_s28  ;;  %v1034_v11 = vsel %vm1032_vm7, %v1001_v57, %v2241_v18 }
  0xb1   : > { %677 = vrot.lane.b32.xlu0 %v2220_v58, %s1867_s28 }
  0xb2   : > { %v2247_v21 = vpop.permute.xlu1 %767 }
  0xb3   : > { %v2249_v25 = vpop.permute.xlu0 %751 }
  0xb4   : > { %738 = vrot.lane.b32.xlu1 %v524_v31, %s1870_s3 }
  0xb5   : > { %722 = vrot.lane.b32.xlu0 %v428_v33, %s1870_s3  ;;  %v600_v33 = vrot.slane %v2220_v58, 1 }
  0xb6   : > { %v803_v27 = vpop.permute.xlu1 %802 }
  0xb7   : > { %v787_v29 = vpop.permute.xlu0 %786  ;;  %v2285_v7 = vsel %vm581_vm0, %v600_v33, %v601_v40  ;;  %v1083_v24 = vsel %vm1065_vm8, %v1050_v20, %v803_v27 }
  0xb8   : > { %740 = vrot.lane.b32.xlu1 %v2253_v26, %s1870_s3  ;;  %v1067_v27 = vsel %vm1065_vm8, %v1034_v11, %v787_v29  ;;  %v953_v29 = vsel %vm933_vm4, %v920_v32, %v2188_v38 }
  0xb9   : > { %724 = vrot.lane.b32.xlu0 %v2257_v28, %s1870_s3  ;;  %v986_v50 = vsel %vm966_vm6, %v953_v29, %v2208_v54  ;;  %v705_v29 = vshll.u32 %v1782_v53, 16 }
  0xba   : > { %v2264_v31 = vpop.permute.xlu1 %804  ;;  %v1019_v38 = vsel %vm999_vm5, %v986_v50, %v2229_v62 }
  0xbb   : > { %v2269_v61 = vpop.permute.xlu0 %788  ;;  %v1052_v54 = vsel %vm1032_vm7, %v1019_v38, %v2247_v21 }
  0xbc   : > { %773 = vrot.lane.b32.xlu1 %v623_v45, %s1871_s4  ;;  %v2288_v45 = vld [vmem:[%s1952_s27 + $0x54] sm:$0xff]   ;;  %v1085_v42 = vsel %vm1065_vm8, %v1052_v54, %v2264_v31 }
  0xbd   : > { %757 = vrot.lane.b32.xlu0 %v2199_v49, %s1871_s4  ;;  %v2295_v49 = vld [vmem:[%s1952_s27 + $0xbc] ss:$0 sps:$4 sm:$0x11]   ;;  %v444_v17 = vshll.u32 %v2288_v45, 16  ;;  %v442_v59 = vshrl.u32 %v2288_v45, 16  ;;  %v603_v11 = vrot.slane %v2288_v45, 1 }
  0xbe   : > { %v850_v63 = vpop.permute.xlu1 %849  ;;  %v545_v37 = vshll.u32 %v2295_v49, 16 }
  0xbf   : > { %v834_v8 = vpop.permute.xlu0 %833  ;;  %v1116_v33 = vsel %vm1098_vm9, %v1083_v24, %v850_v63  ;;  %v446_v6 = vrot.slane %v444_v17, 1  ;;  %v970_v17 = vsel %vm966_vm6, %v937_v47, %v2210_v55 }
  0xc0   : > { %775 = vrot.lane.b32.xlu1 %v2273_v60, %s1871_s4  ;;  %v1100_v52 = vsel %vm1098_vm9, %v1067_v27, %v834_v8  ;;  %v547_v34 = vrot.slane %v545_v37, 1  ;;  %v1003_v20 = vsel %vm999_vm5, %v970_v17, %v2233_v5  ;;  %v628_v37 = vrot.slane %v2295_v49, 1 }
  0xc1   : > { %759 = vrot.lane.b32.xlu0 %v2285_v7, %s1871_s4  ;;  %v447_v8 = vor.u32 %v446_v6, %v442_v59  ;;  %v1036_v22 = vsel %vm1032_vm7, %v1003_v20, %v2249_v25 }
  0xc2   : > { %v852_v15 = vpop.permute.xlu1 %851  ;;  %v548_v62 = vsel %vm356_vm1, %v543_v4, %v547_v34  ;;  %v1069_v57 = vsel %vm1065_vm8, %v1036_v22, %v2269_v61  ;;  %v707_v34 = vrot.slane %v705_v29, 1  ;;  %v746_v22 = vrot.slane %v1782_v53, 1 }
  0xc3   : > { %v836_v30 = vpop.permute.xlu0 %835  ;;  %v1118_v55 = vsel %vm1098_vm9, %v1085_v42, %v852_v15  ;;  %v452_v5 = vsel %vm356_vm1, %v447_v8, %v451_v16 }
  0xc4   : > { %810 = vrot.lane.b32.xlu1 %v2214_v56, %s1872_s5  ;;  %v1102_v31 = vsel %vm1098_vm9, %v1069_v57, %v836_v30  ;;  %v627_v30 = vrot.slane %v2276_v3, 1 }
  0xc5   : > { %794 = vrot.lane.b32.xlu0 %v2220_v58, %s1872_s5 }
  0xc6   : > { %v885_v40 = vpop.permute.xlu1 %884  ;;  %v629_v59 = vsel %vm581_vm0, %v627_v30, %v628_v37  ;;  %v2455_v30 = vld [vmem:[%s1952_s27 + $0xd4] ss:$0 sps:$4 sm:$0x11]  }
  0xc7   : > { %v1149_v41 = vsel %vm1131_vm10, %v1116_v33, %v885_v40  ;;  %v869_v18 = vpop.permute.xlu0 %868  ;;  %v604_v33 = vrot.slane %v2305_v35, 1 }
  0xc8   : > { %812 = vrot.lane.b32.xlu1 %v2276_v3, %s1872_s5  ;;  %1658 = vmatprep.mubr.msk.bf16.mxu1 %vm1184_vm11, %v1149_v41  ;;  %v1133_v63 = vsel %vm1131_vm10, %v1100_v52, %v869_v18  ;;  %v1783_v18 = vld [vmem:[%s1952_s27 + $0xc8] ss:$0 sps:$4 sm:$0x11]  }
  0xc9   : > { %796 = vrot.lane.b32.xlu0 %v2288_v45, %s1872_s5  ;;  %1642 = vmatprep.mubr.msk.bf16.mxu0 %vm1184_vm11, %v1133_v63  ;;  %v605_v27 = vsel %vm581_vm0, %v603_v11, %v604_v33  ;;  %v710_v50 = vshll.u32 %v1783_v18, 16 }
  0xca   : > { %v2345_v1 = vpop.permute.xlu1 %569 }
  0xcb   : > { %v2355_v19 = vpop.permute.xlu0 %553  ;;  %v712_v8 = vrot.slane %v710_v50, 1 }
  0xcc   : > { %857 = vrot.lane.b32.xlu1 %v2253_v26, %s1873_s16  ;;  %v906_v11 = vsel %vm900_vm3, %v2006_v46, %v2355_v19 }
  0xcd   : > { %841 = vrot.lane.b32.xlu0 %v2257_v28, %s1873_s16 }
  0xce   : > { %v887_v21 = vpop.permute.xlu1 %886 }
  0xcf   : > { %v1151_v24 = vsel %vm1131_vm10, %v1118_v55, %v887_v21  ;;  %v871_v36 = vpop.permute.xlu0 %870  ;;  %v747_v55 = vrot.slane %v1783_v18, 1 }
  0xd0   : > { %859 = vrot.lane.b32.xlu1 %v548_v62, %s1873_s16  ;;  %1659 = vmatmul.mubr.msk.bf16.vlgmr.msra.gmra.mrb[0].mxu1 %vm1184_vm11, %v1151_v24  ;;  %v1135_v25 = vsel %vm1131_vm10, %v1102_v31, %v871_v36  ;;  %v2445_v24 = vld [vmem:[%s1952_s27 + $0xcc] sm:$0xff]   ;;  %v922_v31 = vsel %vm900_vm3, %v2000_v39, %v2345_v1 }
  0xd1   : > { %843 = vrot.lane.b32.xlu0 %v452_v5, %s1873_s16  ;;  %1643 = vmatmul.mubr.msk.bf16.vlgmr.msra.gmra.mrb[0].mxu0 %vm1184_vm11, %v1135_v25  ;;  %v824_v37 = vshll.u32 %v2445_v24, 16  ;;  %v822_v46 = vshrl.u32 %v2445_v24, 16 }
  0xd2   : > { %v2379_v15 = vpop.permute.xlu1 %571 }
  0xd3   : > { %v2381_v61 = vpop.permute.xlu0 %555  ;;  %v826_v29 = vrot.slane %v824_v37, 1 }
  0xd4   : > { %892 = vrot.lane.b32.xlu1 %v2273_v60, %s1874_s23 }
  0xd5   : > { %876 = vrot.lane.b32.xlu0 %v2285_v7, %s1874_s23 }
  0xd6   : > { %v651_v32 = vpop.permute.xlu1 %650 }
  0xd7   : > { %v2391_v40 = vpop.permute.xlu0 %634  ;;  %v955_v25 = vsel %vm933_vm4, %v922_v31, %v651_v32 }
  0xd8   : > { %577 = vrot.lane.b32.xlu1 %v2253_v26, %s1869_s30  ;;  %v939_v1 = vsel %vm933_vm4, %v906_v11, %v2391_v40 }
  0xd9   : > { %561 = vrot.lane.b32.xlu0 %v2257_v28, %s1869_s30 }
  0xda   : > { %v2398_v49 = vpop.permute.xlu1 %652 }
  0xdb   : > { %v2401_v41 = vpop.permute.xlu0 %636 }
  0xdc   : > { %894 = vrot.lane.b32.xlu1 %v629_v59, %s1874_s23 }
  0xdd   : > { %878 = vrot.lane.b32.xlu0 %v605_v27, %s1874_s23 }
  0xde   : > { %v688_v35 = vpop.permute.xlu1 %687 }
  0xdf   : > { %v672_v6 = vpop.permute.xlu0 %671  ;;  %v988_v33 = vsel %vm966_vm6, %v955_v25, %v688_v35  ;;  %v866_v25 = vrot.slane %v2455_v30, 1 }
  0xe0   : > { %579 = vrot.lane.b32.xlu1 %v548_v62, %s1869_s30  ;;  %v972_v32 = vsel %vm966_vm6, %v939_v1, %v672_v6 }
  0xe1   : > { %563 = vrot.lane.b32.xlu0 %v452_v5, %s1869_s30 }
  0xe2   : > { %v2407_v26 = vpop.permute.xlu1 %689 }
  0xe3   : > { %v2409_v28 = vpop.permute.xlu0 %673 }
  0xe4   : > { %658 = vrot.lane.b32.xlu1 %v2273_v60, %s1868_s29  ;;  %v703_v60 = vshrl.u32 %v1782_v53, 16 }
  0xe5   : > { %642 = vrot.lane.b32.xlu0 %v2285_v7, %s1868_s29 }
  0xe6   : > { %v735_v0 = vpop.permute.xlu1 %734  ;;  %v708_v38 = vor.u32 %v707_v34, %v703_v60  ;;  %v829_v60 = vshll.u32 %v2455_v30, 16 }
  0xe7   : > { %v719_v52 = vpop.permute.xlu0 %718 }
  0xe8   : > { %660 = vrot.lane.b32.xlu1 %v629_v59, %s1868_s29  ;;  %v713_v54 = vsel %vm356_vm1, %v708_v38, %v712_v8  ;;  %v1005_v19 = vsel %vm999_vm5, %v972_v32, %v719_v52  ;;  %v924_v52 = vsel %vm900_vm3, %v2048_v10, %v2379_v15  ;;  %v827_v38 = vor.u32 %v826_v29, %v822_v46  ;;  %v1786_v15 = vld [vmem:[%s1952_s27 + $0x6c] sm:$0xff]   ;;  %s1616_s27 = sshll.u32 %s1857_s12, 12 }
  0xe9   : > { %644 = vrot.lane.b32.xlu0 %v605_v27, %s1868_s29  ;;  %v831_v8 = vrot.slane %v829_v60, 1 }
  0xea   : > { %v2419_v63 = vpop.permute.xlu1 %736 }
  0xeb   : > { %v2421_v4 = vpop.permute.xlu0 %720  ;;  %v832_v31 = vsel %vm356_vm1, %v827_v38, %v831_v8 }
  0xec   : > { %695 = vrot.lane.b32.xlu1 %v2276_v3, %s1867_s28 }
  0xed   : > { %679 = vrot.lane.b32.xlu0 %v2288_v45, %s1867_s28 }
  0xee   : > { %v770_v7 = vpop.permute.xlu1 %769 }
  0xef   : > { %v754_v47 = vpop.permute.xlu0 %753 }
  0xf0   : > { %697 = vrot.lane.b32.xlu1 %v1782_v53, %s1867_s28  ;;  %v1038_v40 = vsel %vm1032_vm7, %v1005_v19, %v754_v47 }
  0xf1   : > { %681 = vrot.lane.b32.xlu0 %v1965_v2, %s1867_s28  ;;  %s1461_s28 = sshll.u32 %s2618_s26, 4  ;;  %s2657_s28 = int_to_ptr.vmem [resolvable:$true] %s1461_s28 }
  0xf2   : > { %v2430_v16 = vpop.permute.xlu1 %771  ;;  %p1794_p1 = scmp.lt.s32.totalorder %s2657_s28, %s1792_s7 }
  0xf3   : > { %v2432_v17 = vpop.permute.xlu0 %755 }
  0xf4   : > { %742 = vrot.lane.b32.xlu1 %v548_v62, %s1870_s3  ;;  %v2442_v62 = vsel %vm581_vm0, %v746_v22, %v747_v55 }
  0xf5   : > { %726 = vrot.lane.b32.xlu0 %v452_v5, %s1870_s3 }
  0xf6   : > { %v807_v20 = vpop.permute.xlu1 %806 }
  0xf7   : > { %v791_v42 = vpop.permute.xlu0 %790 }
  0xf8   : > { %744 = vrot.lane.b32.xlu1 %v713_v54, %s1870_s3 }
  0xf9   : > { %728 = vrot.lane.b32.xlu0 %v2016_v51, %s1870_s3  ;;  %s2653_s3 = scalar_lea.hbm %s2712_s2, %s1616_s27 }
  0xfa   : > { %v809_v21 = vpop.permute.xlu1 %808 }
  0xfb   : > { %v793_v57 = vpop.permute.xlu0 %792 }
  0xfc   : > { %777 = vrot.lane.b32.xlu1 %v629_v59, %s1871_s4  ;;  %v1021_v59 = vsel %vm999_vm5, %v988_v33, %v735_v0 }
  0xfd   : > { %761 = vrot.lane.b32.xlu0 %v605_v27, %s1871_s4  ;;  %v1054_v27 = vsel %vm1032_vm7, %v1021_v59, %v770_v7 }
  0xfe   : > { %v854_v5 = vpop.permute.xlu1 %853  ;;  %v1087_v35 = vsel %vm1065_vm8, %v1054_v27, %v807_v20  ;;  %v908_v20 = vsel %vm900_vm3, %v2058_v14, %v2381_v61 }
  0xff   : > { %v838_v36 = vpop.permute.xlu0 %837  ;;  %v1120_v0 = vsel %vm1098_vm9, %v1087_v35, %v854_v5 }
 0x100   : > { %779 = vrot.lane.b32.xlu1 %v2442_v62, %s1871_s4 }
 0x101   : > { %763 = vrot.lane.b32.xlu0 %v1978_v12, %s1871_s4  ;;  %s2663_s4 = scalar_lea.sflag [#allocation3], %s161_s24 }
 0x102   : > { %v856_v39 = vpop.permute.xlu1 %855 }
 0x103   : > { %v840_v18 = vpop.permute.xlu0 %839 }
 0x104   : > { %814 = vrot.lane.b32.xlu1 %v1782_v53, %s1872_s5  ;;  %v1071_v53 = vsel %vm1065_vm8, %v1038_v40, %v791_v42 }
 0x105   : > { %798 = vrot.lane.b32.xlu0 %v1965_v2, %s1872_s5  ;;  %v1104_v50 = vsel %vm1098_vm9, %v1071_v53, %v838_v36  ;;  %v957_v2 = vsel %vm933_vm4, %v924_v52, %v2398_v49  ;;  %v941_v49 = vsel %vm933_vm4, %v908_v20, %v2401_v41 }
 0x106   : > { %v889_v6 = vpop.permute.xlu1 %888  ;;  %v990_v10 = vsel %vm966_vm6, %v957_v2, %v2407_v26  ;;  %v974_v55 = vsel %vm966_vm6, %v941_v49, %v2409_v28 }
 0x107   : > { %v1153_v34 = vsel %vm1131_vm10, %v1120_v0, %v889_v6  ;;  %v873_v7 = vpop.permute.xlu0 %872  ;;  %v1023_v22 = vsel %vm999_vm5, %v990_v10, %v2419_v63  ;;  %v1007_v26 = vsel %vm999_vm5, %v974_v55, %v2421_v4 }
 0x108   : > { %816 = vrot.lane.b32.xlu1 %v2445_v24, %s1872_s5  ;;  %1662 = vmatprep.mubr.msk.bf16.mxu1 %vm1184_vm11, %v1153_v34  ;;  %v1137_v47 = vsel %vm1131_vm10, %v1104_v50, %v873_v7  ;;  %v1056_v14 = vsel %vm1032_vm7, %v1023_v22, %v2430_v16  ;;  %v1040_v41 = vsel %vm1032_vm7, %v1007_v26, %v2432_v17  ;;  %v865_v17 = vrot.slane %v2445_v24, 1 }
 0x109   : > { %800 = vrot.lane.b32.xlu0 %v1786_v15, %s1872_s5  ;;  %1646 = vmatprep.mubr.msk.bf16.mxu0 %vm1184_vm11, %v1137_v47  ;;  %v1089_v5 = vsel %vm1065_vm8, %v1056_v14, %v809_v21  ;;  %v1073_v16 = vsel %vm1065_vm8, %v1040_v41, %v793_v57  ;;  %s1787_s5 = scalar_lea.vmem %s2657_s28, 4096 }
 0x10a   : > { %v574_v42 = vpop.permute.xlu1 %573  ;;  %v1122_v63 = vsel %vm1098_vm9, %v1089_v5, %v856_v39  ;;  %v1106_v36 = vsel %vm1098_vm9, %v1073_v16, %v840_v18  ;;  %v867_v37 = vsel %vm581_vm0, %v865_v17, %v866_v25  ;;  %p1788_p12 = scmp.ne.s32.totalorder %s2657_s28, %s1787_s5  ;;  %p1795_p2 = scmp.lt.s32.totalorder %s1793_s8, %s1787_s5 }
 0x10b   : > { %v558_v61 = vpop.permute.xlu0 %557 }
 0x10c   : > { %861 = vrot.lane.b32.xlu1 %v713_v54, %s1873_s16  ;;  %v910_v52 = vsel %vm900_vm3, %v2119_v44, %v558_v61  ;;  %p1789_p13 = pnand %p1788_p12, %p1932_p4  ;;  %p1796_p3 = por %p1795_p2, %p1794_p1 }
 0x10d   : > { %845 = vrot.lane.b32.xlu0 %v2016_v51, %s1873_s16 }
 0x10e   : > { %v891_v28 = vpop.permute.xlu1 %890  ;;  %p1790_p0 = pneg %p1789_p13 }
 0x10f   : > { %v1155_v54 = vsel %vm1131_vm10, %v1122_v63, %v891_v28  ;;  %v875_v4 = vpop.permute.xlu0 %874 }
 0x110   : > { %863 = vrot.lane.b32.xlu1 %v832_v31, %s1873_s16  ;;  %1663 = vmatmul.mubr.msk.bf16.gmra.mrb[4].mxu1 %vm1184_vm11, %v1155_v54  ;;  %v1139_v21 = vsel %vm1131_vm10, %v1106_v36, %v875_v4  ;;  %p1797_p5 = pnand %p1796_p3, %p1790_p0 }
 0x111   : > { %847 = vrot.lane.b32.xlu0 %v2011_v48, %s1873_s16  ;;  %1647 = vmatmul.mubr.msk.bf16.gmra.mrb[4].mxu0 %vm1184_vm11, %v1139_v21 }
 0x112   : > { %v576_v51 = vpop.permute.xlu1 %575 }
 0x113   : > { %v560_v57 = vpop.permute.xlu0 %559  ;;  %v928_v55 = vsel %vm900_vm3, %v2148_v9, %v576_v51 }
 0x114   : > { %896 = vrot.lane.b32.xlu1 %v2442_v62, %s1874_s23  ;;  %v912_v31 = vsel %vm900_vm3, %v2153_v13, %v560_v57 }
 0x115   : > { %880 = vrot.lane.b32.xlu0 %v1978_v12, %s1874_s23 }
 0x116   : > { %v655_v11 = vpop.permute.xlu1 %654 }
 0x117   : > { %v639_v33 = vpop.permute.xlu0 %638 }
 0x118   : > { %898 = vrot.lane.b32.xlu1 %v867_v37, %s1874_s23  ;;  %v943_v2 = vsel %vm933_vm4, %v910_v52, %v639_v33 }
 0x119   : > { %882 = vrot.lane.b32.xlu0 %v1990_v23, %s1874_s23  ;;  %v926_v23 = vsel %vm900_vm3, %v2114_v43, %v574_v42 }
 0x11a   : > { %v657_v48 = vpop.permute.xlu1 %656  ;;  %v959_v34 = vsel %vm933_vm4, %v926_v23, %v655_v11 }
 0x11b   : > { %v641_v24 = vpop.permute.xlu0 %640  ;;  %v961_v26 = vsel %vm933_vm4, %v928_v55, %v657_v48 }
 0x11c   : > { %v945_v28 = vsel %vm933_vm4, %v912_v31, %v641_v24 }
 0x11e   : > { %v692_v30 = vpop.permute.xlu1 %691 }
 0x11f   : > { %v676_v39 = vpop.permute.xlu0 %675  ;;  %v992_v50 = vsel %vm966_vm6, %v959_v34, %v692_v30 }
 0x120   : > { %v976_v38 = vsel %vm966_vm6, %v943_v2, %v676_v39 }
 0x122   : > { %v694_v1 = vpop.permute.xlu1 %693 }
 0x123   : > { %v678_v59 = vpop.permute.xlu0 %677  ;;  %v994_v41 = vsel %vm966_vm6, %v961_v26, %v694_v1 }
 0x124   : > { %v978_v16 = vsel %vm966_vm6, %v945_v28, %v678_v59 }
 0x126   : > { %v739_v32 = vpop.permute.xlu1 %738 }
 0x127   : > { %v723_v62 = vpop.permute.xlu0 %722  ;;  %v1025_v47 = vsel %vm999_vm5, %v992_v50, %v739_v32 }
 0x128   : > { %v1009_v43 = vsel %vm999_vm5, %v976_v38, %v723_v62 }
 0x12a   : > { %v741_v27 = vpop.permute.xlu1 %740 }
 0x12b   : > { %v725_v18 = vpop.permute.xlu0 %724  ;;  %v1027_v9 = vsel %vm999_vm5, %v994_v41, %v741_v27 }
 0x12c   : > { %v1011_v4 = vsel %vm999_vm5, %v978_v16, %v725_v18 }
 0x12e   : > { %v774_v46 = vpop.permute.xlu1 %773 }
 0x12f   : > { %v758_v19 = vpop.permute.xlu0 %757  ;;  %v1058_v8 = vsel %vm1032_vm7, %v1025_v47, %v774_v46 }
 0x130   : > { %v1042_v15 = vsel %vm1032_vm7, %v1009_v43, %v758_v19 }
 0x132   : > { %v776_v12 = vpop.permute.xlu1 %775 }
 0x133   : > { %v760_v35 = vpop.permute.xlu0 %759  ;;  %v1060_v54 = vsel %vm1032_vm7, %v1027_v9, %v776_v12 }
 0x134   : > { %v1044_v13 = vsel %vm1032_vm7, %v1011_v4, %v760_v35 }
 0x136   : > { %v811_v29 = vpop.permute.xlu1 %810 }
 0x137   : > { %v795_v60 = vpop.permute.xlu0 %794  ;;  %v1091_v10 = vsel %vm1065_vm8, %v1058_v8, %v811_v29 }
 0x138   : > { %v1075_v49 = vsel %vm1065_vm8, %v1042_v15, %v795_v60 }
 0x13a   : > { %v813_v40 = vpop.permute.xlu1 %812 }
 0x13b   : > { %v797_v0 = vpop.permute.xlu0 %796  ;;  %v1093_v21 = vsel %vm1065_vm8, %v1060_v54, %v813_v40 }
 0x13c   : > { %v1077_v51 = vsel %vm1065_vm8, %v1044_v13, %v797_v0 }
 0x13e   : > { %v858_v6 = vpop.permute.xlu1 %857 }
 0x13f   : > { %v842_v53 = vpop.permute.xlu0 %841  ;;  %v1124_v44 = vsel %vm1098_vm9, %v1091_v10, %v858_v6 }
 0x140   : > { %v1108_v14 = vsel %vm1098_vm9, %v1075_v49, %v842_v53 }
 0x142   : > { %v860_v7 = vpop.permute.xlu1 %859 }
 0x143   : > { %v844_v20 = vpop.permute.xlu0 %843  ;;  %v1126_v17 = vsel %vm1098_vm9, %v1093_v21, %v860_v7 }
 0x144   : > { %v1110_v37 = vsel %vm1098_vm9, %v1077_v51, %v844_v20 }
 0x146   : > { %v893_v42 = vpop.permute.xlu1 %892 }
 0x147   : > { %v1157_v22 = vsel %vm1131_vm10, %v1124_v44, %v893_v42  ;;  %v877_v61 = vpop.permute.xlu0 %876 }
 0x148   : > { %1666 = vmatprep.mubr.msk.bf16.mxu1 %vm1184_vm11, %v1157_v22  ;;  %v1141_v5 = vsel %vm1131_vm10, %v1108_v14, %v877_v61 }
 0x149   : > { %1650 = vmatprep.mubr.msk.bf16.mxu0 %vm1184_vm11, %v1141_v5 }
 0x14a   : > { %v578_v63 = vpop.permute.xlu1 %577 }
 0x14b   : > { %v562_v36 = vpop.permute.xlu0 %561  ;;  %v930_v50 = vsel %vm900_vm3, %v2214_v56, %v578_v63 }
 0x14c   : > { %v914_v47 = vsel %vm900_vm3, %v2220_v58, %v562_v36 }
 0x14e   : > { %v895_v25 = vpop.permute.xlu1 %894 }
 0x14f   : > { %v1159_v57 = vsel %vm1131_vm10, %v1126_v17, %v895_v25  ;;  %v879_v11 = vpop.permute.xlu0 %878 }
 0x150   : > { %1667 = vmatmul.mubr.msk.bf16.gmra.mrb[8].mxu1 %vm1184_vm11, %v1159_v57  ;;  %v1143_v33 = vsel %vm1131_vm10, %v1110_v37, %v879_v11 }
 0x151   : > { %1651 = vmatmul.mubr.msk.bf16.gmra.mrb[8].mxu0 %vm1184_vm11, %v1143_v33 }
 0x152   : > { %v580_v48 = vpop.permute.xlu1 %579 }
 0x153   : > { %v564_v24 = vpop.permute.xlu0 %563  ;;  %v932_v10 = vsel %vm900_vm3, %v2276_v3, %v580_v48 }
 0x154   : > { %v916_v22 = vsel %vm900_vm3, %v2288_v45, %v564_v24 }
 0x156   : > { %v659_v30 = vpop.permute.xlu1 %658 }
 0x157   : > { %v643_v39 = vpop.permute.xlu0 %642  ;;  %v963_v2 = vsel %vm933_vm4, %v930_v50, %v659_v30 }
 0x158   : > { %v947_v20 = vsel %vm933_vm4, %v914_v47, %v643_v39 }
 0x15a   : > { %v661_v1 = vpop.permute.xlu1 %660 }
 0x15b   : > { %v645_v59 = vpop.permute.xlu0 %644  ;;  %v965_v42 = vsel %vm933_vm4, %v932_v10, %v661_v1 }
 0x15c   : > { %v949_v26 = vsel %vm933_vm4, %v916_v22, %v645_v59 }
 0x15e   : > { %v696_v32 = vpop.permute.xlu1 %695 }
 0x15f   : > { %v680_v62 = vpop.permute.xlu0 %679  ;;  %v996_v38 = vsel %vm966_vm6, %v963_v2, %v696_v32 }
 0x160   : > { %v980_v15 = vsel %vm966_vm6, %v947_v20, %v680_v62 }
 0x162   : > { %v698_v27 = vpop.permute.xlu1 %697 }
 0x163   : > { %v682_v18 = vpop.permute.xlu0 %681  ;;  %v998_v55 = vsel %vm966_vm6, %v965_v42, %v698_v27 }
 0x164   : > { %v982_v63 = vsel %vm966_vm6, %v949_v26, %v682_v18 }
 0x166   : > { %v743_v46 = vpop.permute.xlu1 %742 }
 0x167   : > { %v727_v19 = vpop.permute.xlu0 %726  ;;  %v1029_v43 = vsel %vm999_vm5, %v996_v38, %v743_v46 }
 0x168   : > { %v1013_v49 = vsel %vm999_vm5, %v980_v15, %v727_v19 }
 0x16a   : > { %v745_v12 = vpop.permute.xlu1 %744 }
 0x16b   : > { %v729_v35 = vpop.permute.xlu0 %728  ;;  %v1031_v5 = vsel %vm999_vm5, %v998_v55, %v745_v12 }
 0x16c   : > { %v1015_v16 = vsel %vm999_vm5, %v982_v63, %v729_v35 }
 0x16e   : > { %v778_v29 = vpop.permute.xlu1 %777 }
 0x16f   : > { %v762_v60 = vpop.permute.xlu0 %761  ;;  %v1062_v56 = vsel %vm1032_vm7, %v1029_v43, %v778_v29 }
 0x170   : > { %v1046_v14 = vsel %vm1032_vm7, %v1013_v49, %v762_v60 }
 0x172   : > { %v780_v40 = vpop.permute.xlu1 %779 }
 0x173   : > { %v764_v0 = vpop.permute.xlu0 %763  ;;  %v1064_v28 = vsel %vm1032_vm7, %v1031_v5, %v780_v40 }
 0x174   : > { %v1048_v4 = vsel %vm1032_vm7, %v1015_v16, %v764_v0 }
 0x176   : > { %v815_v6 = vpop.permute.xlu1 %814 }
 0x177   : > { %v799_v23 = vpop.permute.xlu0 %798  ;;  %v1095_v58 = vsel %vm1065_vm8, %v1062_v56, %v815_v6 }
 0x178   : > { %v1079_v31 = vsel %vm1065_vm8, %v1046_v14, %v799_v23 }
 0x17a   : > { %v817_v53 = vpop.permute.xlu1 %816 }
 0x17b   : > { %v801_v34 = vpop.permute.xlu0 %800  ;;  %v1097_v54 = vsel %vm1065_vm8, %v1064_v28, %v817_v53 }
 0x17c   : > { %v1081_v17 = vsel %vm1065_vm8, %v1048_v4, %v801_v34 }
 0x17e   : > { %v862_v52 = vpop.permute.xlu1 %861 }
 0x17f   : > { %v846_v7 = vpop.permute.xlu0 %845  ;;  %v1128_v3 = vsel %vm1098_vm9, %v1095_v58, %v862_v52 }
 0x180   : > { %v1112_v45 = vsel %vm1098_vm9, %v1079_v31, %v846_v7 }
 0x182   : > { %v864_v8 = vpop.permute.xlu1 %863 }
 0x183   : > { %v848_v44 = vpop.permute.xlu0 %847  ;;  %v1130_v21 = vsel %vm1098_vm9, %v1097_v54, %v864_v8 }
 0x184   : > { %v1114_v51 = vsel %vm1098_vm9, %v1081_v17, %v848_v44 }
 0x186   : > { %v897_v61 = vpop.permute.xlu1 %896 }
 0x187   : > { %v1161_v41 = vsel %vm1131_vm10, %v1128_v3, %v897_v61  ;;  %v881_v9 = vpop.permute.xlu0 %880 }
 0x188   : > { %1670 = vmatprep.mubr.msk.bf16.mxu1 %vm1184_vm11, %v1161_v41  ;;  %v1145_v36 = vsel %vm1131_vm10, %v1112_v45, %v881_v9 }
 0x189   : > { %1654 = vmatprep.mubr.msk.bf16.mxu0 %vm1184_vm11, %v1145_v36 }
 0x18a   : > { %v899_v13 = vpop.permute.xlu1 %898 }
 0x18b   : > { %v1163_v25 = vsel %vm1131_vm10, %v1130_v21, %v899_v13  ;;  %v883_v57 = vpop.permute.xlu0 %882 }
 0x18c   : > { %1671 = vmatmul.mubr.msk.bf16.gmra.mrb[12].mxu1 %vm1184_vm11, %v1163_v25  ;;  %v1147_v37 = vsel %vm1131_vm10, %v1114_v51, %v883_v57 }
 0x18d   : > { %1655 = vmatmul.mubr.msk.bf16.gmra.mrb[12].mxu0 %vm1184_vm11, %v1147_v37 }
 0x1a3   : > { %v1660_v11 = vpop.f32.mrb[0].mxu1 }
 0x1a4   : > { %v1400_v33 = vmax.f32 %v1660_v11, 0.0  ;;  %v1319_v48 = vpop.f32.mrb[1].mxu1  ;;  %v1644_v24 = vpop.f32.mrb[0].mxu0 }
 0x1a5   : > { %v1398_v30 = vmax.f32 %v1319_v48, 0.0  ;;  %v1661_v39 = vpop.f32.mrb[2].mxu1  ;;  %v1384_v1 = vmax.f32 %v1644_v24, 0.0  ;;  %v1255_v59 = vpop.f32.mrb[1].mxu0 }
 0x1a6   : > { %1432 = vst [vmem:[%s2618_s26 + $0x90] sm:$0xff] %v1400_v33  ;;  %v1401_v32 = vmax.f32 %v1661_v39, 0.0  ;;  %v1322_v62 = vpop.f32.mrb[3].mxu1  ;;  %v1382_v27 = vmax.f32 %v1255_v59, 0.0  ;;  %v1645_v18 = vpop.f32.mrb[2].mxu0 }
 0x1a7   : > { %1430 = vst [vmem:[%s2618_s26 + $0x80] sm:$0xff] %v1398_v30  ;;  %v1399_v46 = vmax.f32 %v1322_v62, 0.0  ;;  %1416 = vst [vmem:[%s2618_s26 + $0x10] sm:$0xff] %v1384_v1  ;;  %v1385_v19 = vmax.f32 %v1645_v18, 0.0  ;;  %v1258_v12 = vpop.f32.mrb[3].mxu0 }
 0x1a8   : > { %1433 = vst [vmem:[%s2618_s26 + $0x98] sm:$0xff] %v1401_v32  ;;  %1414 = vst [vmem:[%s2618_s26] sm:$0xff] %v1382_v27  ;;  %v1383_v35 = vmax.f32 %v1258_v12, 0.0 }
 0x1a9   : > { %1431 = vst [vmem:[%s2618_s26 + $0x88] sm:$0xff] %v1399_v46  ;;  %1417 = vst [vmem:[%s2618_s26 + $0x18] sm:$0xff] %v1385_v19 }
 0x1aa   : > { %1415 = vst [vmem:[%s2618_s26 + $0x8] sm:$0xff] %v1383_v35 }
 0x1e3   : > { %v1664_v29 = vpop.f32.mrb[4].mxu1 }
 0x1e4   : > { %v1404_v60 = vmax.f32 %v1664_v29, 0.0  ;;  %v1335_v40 = vpop.f32.mrb[5].mxu1  ;;  %v1648_v0 = vpop.f32.mrb[4].mxu0 }
 0x1e5   : > { %v1402_v6 = vmax.f32 %v1335_v40, 0.0  ;;  %v1665_v23 = vpop.f32.mrb[6].mxu1  ;;  %v1388_v53 = vmax.f32 %v1648_v0, 0.0  ;;  %v1271_v34 = vpop.f32.mrb[5].mxu0 }
 0x1e6   : > { %1436 = vst [vmem:[%s2618_s26 + $0xb0] sm:$0xff] %v1404_v60  ;;  %v1405_v52 = vmax.f32 %v1665_v23, 0.0  ;;  %v1338_v50 = vpop.f32.mrb[7].mxu1  ;;  %v1386_v7 = vmax.f32 %v1271_v34, 0.0  ;;  %v1649_v2 = vpop.f32.mrb[6].mxu0 }
 0x1e7   : > { %1434 = vst [vmem:[%s2618_s26 + $0xa0] sm:$0xff] %v1402_v6  ;;  %v1403_v47 = vmax.f32 %v1338_v50, 0.0  ;;  %1420 = vst [vmem:[%s2618_s26 + $0x30] sm:$0xff] %v1388_v53  ;;  %v1389_v38 = vmax.f32 %v1649_v2, 0.0  ;;  %v1274_v8 = vpop.f32.mrb[7].mxu0 }
 0x1e8   : > { %1437 = vst [vmem:[%s2618_s26 + $0xb8] sm:$0xff] %v1405_v52  ;;  %1418 = vst [vmem:[%s2618_s26 + $0x20] sm:$0xff] %v1386_v7  ;;  %v1387_v20 = vmax.f32 %v1274_v8, 0.0 }
 0x1e9   : > { %1435 = vst [vmem:[%s2618_s26 + $0xa8] sm:$0xff] %v1403_v47  ;;  %1421 = vst [vmem:[%s2618_s26 + $0x38] sm:$0xff] %v1389_v38 }
 0x1ea   : > { %1419 = vst [vmem:[%s2618_s26 + $0x28] sm:$0xff] %v1387_v20 }
 0x223   : > { %v1668_v43 = vpop.f32.mrb[8].mxu1 }
 0x224   : > { %v1408_v10 = vmax.f32 %v1668_v43, 0.0  ;;  %v1351_v15 = vpop.f32.mrb[9].mxu1  ;;  %v1652_v56 = vpop.f32.mrb[8].mxu0 }
 0x225   : > { %v1406_v44 = vmax.f32 %v1351_v15, 0.0  ;;  %v1669_v42 = vpop.f32.mrb[10].mxu1  ;;  %v1392_v49 = vmax.f32 %v1652_v56, 0.0  ;;  %v1287_v58 = vpop.f32.mrb[9].mxu0 }
 0x226   : > { %1440 = vst [vmem:[%s2618_s26 + $0xd0] sm:$0xff] %v1408_v10  ;;  %v1409_v22 = vmax.f32 %v1669_v42, 0.0  ;;  %v1354_v55 = vpop.f32.mrb[11].mxu1  ;;  %v1390_v14 = vmax.f32 %v1287_v58, 0.0  ;;  %v1653_v3 = vpop.f32.mrb[10].mxu0 }
 0x227   : > { %1438 = vst [vmem:[%s2618_s26 + $0xc0] sm:$0xff] %v1406_v44  ;;  %v1407_v61 = vmax.f32 %v1354_v55, 0.0  ;;  %1424 = vst [vmem:[%s2618_s26 + $0x50] sm:$0xff] %v1392_v49  ;;  %v1393_v26 = vmax.f32 %v1653_v3, 0.0  ;;  %v1290_v5 = vpop.f32.mrb[11].mxu0 }
 0x228   : > { %1441 = vst [vmem:[%s2618_s26 + $0xd8] sm:$0xff] %v1409_v22  ;;  %1422 = vst [vmem:[%s2618_s26 + $0x40] sm:$0xff] %v1390_v14  ;;  %v1391_v31 = vmax.f32 %v1290_v5, 0.0 }
 0x229   : > { %1439 = vst [vmem:[%s2618_s26 + $0xc8] sm:$0xff] %v1407_v61  ;;  %1425 = vst [vmem:[%s2618_s26 + $0x58] sm:$0xff] %v1393_v26 }
 0x22a   : > { %1423 = vst [vmem:[%s2618_s26 + $0x48] sm:$0xff] %v1391_v31 }
 0x25f   : > { %v1672_v41 = vpop.f32.mrb[12].mxu1 }
 0x260   : > { %v1412_v63 = vmax.f32 %v1672_v41, 0.0  ;;  %v1367_v28 = vpop.f32.mrb[13].mxu1  ;;  %v1656_v45 = vpop.f32.mrb[12].mxu0 }
 0x261   : > { %v1410_v9 = vmax.f32 %v1367_v28, 0.0  ;;  %v1673_v16 = vpop.f32.mrb[14].mxu1  ;;  %v1396_v54 = vmax.f32 %v1656_v45, 0.0  ;;  %v1303_v36 = vpop.f32.mrb[13].mxu0 }
 0x262   : > { %1444 = vst [vmem:[%s2618_s26 + $0xf0] sm:$0xff] %v1412_v63  ;;  %v1413_v4 = vmax.f32 %v1673_v16, 0.0  ;;  %v1370_v21 = vpop.f32.mrb[15].mxu1  ;;  %v1394_v13 = vmax.f32 %v1303_v36, 0.0  ;;  %v1657_v17 = vpop.f32.mrb[14].mxu0 }
 0x263   : > { %1442 = vst [vmem:[%s2618_s26 + $0xe0] sm:$0xff] %v1410_v9  ;;  %v1411_v25 = vmax.f32 %v1370_v21, 0.0  ;;  %1428 = vst [vmem:[%s2618_s26 + $0x70] sm:$0xff] %v1396_v54  ;;  %v1397_v51 = vmax.f32 %v1657_v17, 0.0  ;;  %v1306_v57 = vpop.f32.mrb[15].mxu0 }
 0x264   : > { %1445 = vst [vmem:[%s2618_s26 + $0xf8] sm:$0xff] %v1413_v4  ;;  %1426 = vst [vmem:[%s2618_s26 + $0x60] sm:$0xff] %v1394_v13  ;;  %v1395_v37 = vmax.f32 %v1306_v57, 0.0 }
 0x265   : > { %1443 = vst [vmem:[%s2618_s26 + $0xe8] sm:$0xff] %v1411_v25  ;;  %1429 = vst [vmem:[%s2618_s26 + $0x78] sm:$0xff] %v1397_v51 }
 0x266   : > { %1427 = vst [vmem:[%s2618_s26 + $0x68] sm:$0xff] %v1395_v37 }
 0x267   : > { %1800 = shalt.err (!%p1797_p5)
}
 0x268   : > { %s1801_s15 = scalar_lea.hbm %s2653_s3, 4096  ;;  %s1805_s20 = scalar_lea.hbm %s2712_s2, 8192 }
 0x269   : > { %p1802_p6 = scmp.ne.s32.totalorder %s2653_s3, %s1801_s15  ;;  %p1806_p10 = scmp.lt.u32.totalorder %s2653_s3, %s2712_s2 }
 0x26a   : > { %p1807_p11 = scmp.lt.u32.totalorder %s1805_s20, %s1801_s15  ;;  %p1809_p13 = scmp.lt.u32.totalorder %s1801_s15, %s2653_s3 }
 0x26b   : > { %p1803_p7 = pnand %p1802_p6, %p1932_p4 }
 0x26c   : > { %p1808_p12 = por %p1807_p11, %p1806_p10 }
 0x26d   : > { %p1804_p9 = pneg %p1803_p7 }
 0x26e   : > { %p1810_p0 = por %p1809_p13, %p1808_p12 }
 0x270   : > { %p1811_p1 = pnand %p1810_p0, %p1804_p9 }
 0x272   : > { %1814 = shalt.err (!%p1811_p1)
}
 0x273   : > { %s1876_s25 = smov 128  }
 0x274   : > { %1683 = dma.vmem_to_hbm [thread:$0]  (%p1932_p4), %s2657_s28, 4096, %s2653_s3, %s2663_s4, %s1876_s25, %s1876_s25, %s1868_s29  }
 0x275 PF: > { %p1689_p2 = scmp.ge.s32.totalorder %s1865_s14, 2  ;;  %s1476_s26 = sand.u32 1, %s1845_s9  }
 0x276   : > { %s1477_s27 = scalar_lea.sflag [#allocation3], %s1476_s26 }
 0x277   : > { %p1686_p3 = pnand %p1689_p2, %p1939_p8 }
 0x279   : > { %1840 = dma.done.wait (!%p1686_p3), %s1477_s27, 4096  }
 0x27a   : > { %1842 = vsyncadd (!%p1686_p3), %s1477_s27, 4294963200  ;;  %s15_s14 = sadd.s32 1, %s1865_s14   ;;  %s2715_s9 = smov %s1849_s10 }
 0x27b   : > { %p12_p5 = scmp.ge.s32.totalorder %s15_s14, 4   ;;  %s2716_s10 = smov %s1853_s11 }
 0x27c   : > { %s2717_s11 = smov %s1945_s22  ;;  %s2718_s12 = smov %s1861_s13 }
 0x27d   : > { %s2719_s13 = smov %s2721_s17  ;;  %14 = sbr.rel (!%p12_p5) target bundleno = 4 (0x4), region = 66 }
 0x284   :  { %1482 = vsyncpa [#allocation3], 1 }
 0x285   :  { %1484 = vsyncpa [#allocation3 + $0x1], 1 }

</bundles_post_ra>
